<compile_context>
chip_gen: v7x
topology: tpu7x:2x2x1
jax: 0.10.0
libtpu: 0.0.40
codegen_flags: <defaults>
</compile_context>

<pallas_src>
import jax
import jax.numpy as jnp
from jax.experimental import pallas as pl
from jax.experimental.pallas import tpu as pltpu


def _round_up(n, m):
    return ((n + m - 1) // m) * m


def _cdiv(a, b):
    return (a + b - 1) // b


def _mlp_kernel(x_ref, w1_ref, b1_ref, w2_ref, b2_ref, w3_ref, b3_ref, o_ref):
    # Layer 1: Linear(input_dim -> 128) + ReLU   (Dropout = identity in eval)
    # x arrives in f32 straight from HBM; cast to bf16 just before the MXU dot.
    x = x_ref[...].astype(jnp.bfloat16)
    h1 = jnp.dot(x, w1_ref[...], preferred_element_type=jnp.float32)
    h1 = jnp.maximum(h1 + b1_ref[...], 0.0)
    # Layer 2: Linear(128 -> 64) + ReLU          (Dropout = identity in eval)
    h2 = jnp.dot(h1.astype(jnp.bfloat16), w2_ref[...],
                 preferred_element_type=jnp.float32)
    h2 = jnp.maximum(h2 + b2_ref[...], 0.0)
    # Layer 3: Linear(64 -> 1), produced lane-dense: transpose h2 to (64, TB)
    # (XLU), multiply by the (64, 1) weight column (VPU), reduce over the
    # sublane axis (XLU) -> (1, TB) row with batch on lanes. b3 is an SMEM
    # scalar.
    h2_t = h2.T                                            # (64, TB)
    o_row = jnp.sum(h2_t * w3_ref[...], axis=0, keepdims=True) + b3_ref[0, 0]
    o_ref[...] = o_row.astype(o_ref.dtype)


def airbnb_regressor_forward(x, params, tb=1024):
    """x: (B, input_dim) f32. params: dict of w1,b1,w2,b2,w3,b3. Returns (B, 1) f32."""
    B, input_dim = x.shape

    # Batch tile: multiple of 8 sublanes, at most `tb`, no larger than needed.
    tb_eff = min(max(8, _round_up(tb, 8)), _round_up(B, 8))
    # v7x: for reasonably large batches make sure the grid has >= 2 steps so
    # dimension_semantics=("parallel",) can use both TensorCores.
    if B >= 512 and _cdiv(B, tb_eff) < 2:
        tb_eff = _round_up(_cdiv(B, 2), 8)
    num_tiles = _cdiv(B, tb_eff)

    # Tiny weights: bf16 for the MXU operands, f32 biases; b3 scalar in SMEM.
    w1 = params["w1"].astype(jnp.bfloat16)
    b1 = params["b1"].reshape(1, -1).astype(jnp.float32)
    w2 = params["w2"].astype(jnp.bfloat16)
    b2 = params["b2"].reshape(1, -1).astype(jnp.float32)
    w3_col = params["w3"].reshape(-1, 1).astype(jnp.float32)   # (64, 1)
    b3 = params["b3"].reshape(1, 1).astype(jnp.float32)        # SMEM scalar

    hid1 = w1.shape[1]
    hid2 = w2.shape[1]

    # x: streamed batch tiles in native dtype; ragged last tile handled by the
    # cdiv grid (padding rows only pollute output lanes that are sliced off).
    if num_tiles > 2:
        x_spec = pl.BlockSpec((tb_eff, input_dim), lambda i: (i, 0),
                              pipeline_mode=pl.Buffered(3))
    else:
        x_spec = pl.BlockSpec((tb_eff, input_dim), lambda i: (i, 0))

    flops = 2 * B * (input_dim * hid1 + hid1 * hid2 + hid2)
    bytes_accessed = (x.size * x.dtype.itemsize
                      + w1.size * 2 + w2.size * 2
                      + b1.size * 4 + b2.size * 4 + w3_col.size * 4 + 4
                      + num_tiles * tb_eff * 4)

    out = pl.pallas_call(
        _mlp_kernel,
        out_shape=jax.ShapeDtypeStruct((num_tiles, tb_eff), jnp.float32),
        grid=(num_tiles,),
        in_specs=[
            x_spec,
            # Weights / biases: full-shape, constant index_map -> DMA'd once,
            # resident in VMEM across the whole grid.
            pl.BlockSpec((input_dim, hid1), lambda i: (0, 0)),
            pl.BlockSpec((1, hid1), lambda i: (0, 0)),
            pl.BlockSpec((hid1, hid2), lambda i: (0, 0)),
            pl.BlockSpec((1, hid2), lambda i: (0, 0)),
            pl.BlockSpec((hid2, 1), lambda i: (0, 0)),
            # b3: single scalar, lives in SMEM.
            pl.BlockSpec(memory_space=pltpu.MemorySpace.SMEM),
        ],
        # Lane-dense output: one (1, tb_eff) row per batch tile.
        out_specs=pl.BlockSpec((1, tb_eff), lambda i: (i, 0)),
        compiler_params=pltpu.CompilerParams(
            dimension_semantics=("parallel",)),
        cost_estimate=pl.CostEstimate(
            flops=flops, transcendentals=0, bytes_accessed=bytes_accessed),
    )(x, w1, b1, w2, b2, w3_col, b3)

    # (num_tiles, tb_eff) lane-dense slab -> (B, 1); ragged-tile tail dropped.
    return out.reshape(-1)[:B].reshape(B, 1)


def init_params(input_dim, key):
    """Deterministic synthetic init (PyTorch-like uniform fan-in scaling)."""
    ks = jax.random.split(key, 6)

    def lin(kw, kb, fan_in, fan_out):
        bound = 1.0 / jnp.sqrt(fan_in)
        w = jax.random.uniform(kw, (fan_in, fan_out), jnp.float32, -bound, bound)
        b = jax.random.uniform(kb, (1, fan_out), jnp.float32, -bound, bound)
        return w, b

    w1, b1 = lin(ks[0], ks[1], input_dim, 128)
    w2, b2 = lin(ks[2], ks[3], 128, 64)
    w3, b3 = lin(ks[4], ks[5], 64, 1)
    return dict(w1=w1, b1=b1, w2=w2, b2=b2, w3=w3, b3=b3)


def _reference(x, p):
    # Matches the kernel's numerics: bf16 matmul inputs, f32 accumulation,
    # f32 bias/ReLU, final layer as multiply + reduce in f32.
    h1 = jnp.dot(x.astype(jnp.bfloat16), p["w1"].astype(jnp.bfloat16),
                 preferred_element_type=jnp.float32)
    h1 = jnp.maximum(h1 + p["b1"], 0.0)
    h2 = jnp.dot(h1.astype(jnp.bfloat16), p["w2"].astype(jnp.bfloat16),
                 preferred_element_type=jnp.float32)
    h2 = jnp.maximum(h2 + p["b2"], 0.0)
    return (jnp.sum(h2 * p["w3"].reshape(1, -1), axis=-1, keepdims=True)
            + p["b3"].reshape(1, 1))


if __name__ == "__main__":
    key = jax.random.PRNGKey(0)
    k_x, k_p, k_x2 = jax.random.split(key, 3)

    B, input_dim = 8, 32
    x = jax.random.normal(k_x, (B, input_dim), jnp.float32)
    params = init_params(input_dim, k_p)

    out = airbnb_regressor_forward(x, params)
    out = jax.block_until_ready(out)
    ref = _reference(x, params)
    assert out.shape == (B, 1)
    assert jnp.allclose(out, ref, atol=1e-4, rtol=1e-4)

    # Exercise the multi-tile cdiv grid (ragged last tile) + Buffered(3) path.
    B2 = 300
    x2 = jax.random.normal(k_x2, (B2, input_dim), jnp.float32)
    out2 = jax.block_until_ready(airbnb_regressor_forward(x2, params, tb=128))
    ref2 = _reference(x2, params)
    assert out2.shape == (B2, 1)
    assert jnp.allclose(out2, ref2, atol=1e-4, rtol=1e-4)

    print("KERNEL_OK")
</pallas_src>

<mosaic_0001>
module attributes {stable_mosaic.version = 11 : i64} {
  func.func @_mlp_kernel(%arg0: i32, %arg1: memref<8x32xf32, #tpu.memory_space<vmem>>, %arg2: memref<32x128xbf16, #tpu.memory_space<vmem>>, %arg3: memref<1x128xf32, #tpu.memory_space<vmem>>, %arg4: memref<128x64xbf16, #tpu.memory_space<vmem>>, %arg5: memref<1x64xf32, #tpu.memory_space<vmem>>, %arg6: memref<64x1xf32, #tpu.memory_space<vmem>>, %arg7: memref<1x1xf32, #tpu.memory_space<smem>>, %arg8: memref<1x8xf32, #tpu.memory_space<vmem>>) attributes {dimension_semantics = [#tpu.dimension_semantics<parallel>], iteration_bounds = array<i64: 1>, scalar_prefetch = 0 : i64, scratch_operands = 0 : i64, tpu.core_type = #tpu.core_type<tc>, window_params = [{transform_indices = @transform_0, window_bounds = array<i64: 8, 32>}, {pipeline_mode = #tpu.pipeline_mode<synchronous>, transform_indices = @transform_1, window_bounds = array<i64: 32, 128>}, {pipeline_mode = #tpu.pipeline_mode<synchronous>, transform_indices = @transform_2, window_bounds = array<i64: 1, 128>}, {pipeline_mode = #tpu.pipeline_mode<synchronous>, transform_indices = @transform_3, window_bounds = array<i64: 128, 64>}, {pipeline_mode = #tpu.pipeline_mode<synchronous>, transform_indices = @transform_4, window_bounds = array<i64: 1, 64>}, {pipeline_mode = #tpu.pipeline_mode<synchronous>, transform_indices = @transform_5, window_bounds = array<i64: 64, 1>}, {transform_indices = @transform_6, window_bounds = array<i64: 1, 1>}, {transform_indices = @transform_7, window_bounds = array<i64: 1, 8>}]} {
    %c0 = arith.constant 0 : index
    %c0_0 = arith.constant 0 : index
    %0 = vector.load %arg1[%c0, %c0_0] : memref<8x32xf32, #tpu.memory_space<vmem>>, vector<8x32xf32>
    %1 = arith.truncf %0 : vector<8x32xf32> to vector<8x32xbf16>
    %c0_1 = arith.constant 0 : index
    %c0_2 = arith.constant 0 : index
    %2 = vector.load %arg2[%c0_1, %c0_2] : memref<32x128xbf16, #tpu.memory_space<vmem>>, vector<32x128xbf16>
    %cst = arith.constant dense<0.000000e+00> : vector<8x128xf32>
    %3 = tpu.matmul %1, %2, %cst {dimension_numbers = #tpu.dot_dimension_numbers<[1], [0], [0], [1], [0, 0, 1, 1], [], []>} : vector<8x32xbf16>, vector<32x128xbf16>, vector<8x128xf32> -> vector<8x128xf32>
    %c0_3 = arith.constant 0 : index
    %c0_4 = arith.constant 0 : index
    %4 = vector.load %arg3[%c0_3, %c0_4] : memref<1x128xf32, #tpu.memory_space<vmem>>, vector<1x128xf32>
    %5 = vector.broadcast %4 : vector<1x128xf32> to vector<8x128xf32>
    %6 = arith.addf %3, %5 : vector<8x128xf32>
    %cst_5 = arith.constant 0.000000e+00 : f32
    %7 = vector.broadcast %cst_5 : f32 to vector<8x128xf32>
    %8 = arith.maximumf %6, %7 : vector<8x128xf32>
    %9 = arith.truncf %8 : vector<8x128xf32> to vector<8x128xbf16>
    %c0_6 = arith.constant 0 : index
    %c0_7 = arith.constant 0 : index
    %10 = vector.load %arg4[%c0_6, %c0_7] : memref<128x64xbf16, #tpu.memory_space<vmem>>, vector<128x64xbf16>
    %cst_8 = arith.constant dense<0.000000e+00> : vector<8x64xf32>
    %11 = tpu.matmul %9, %10, %cst_8 {dimension_numbers = #tpu.dot_dimension_numbers<[1], [0], [0], [1], [0, 0, 1, 1], [], []>} : vector<8x128xbf16>, vector<128x64xbf16>, vector<8x64xf32> -> vector<8x64xf32>
    %c0_9 = arith.constant 0 : index
    %c0_10 = arith.constant 0 : index
    %12 = vector.load %arg5[%c0_9, %c0_10] : memref<1x64xf32, #tpu.memory_space<vmem>>, vector<1x64xf32>
    %13 = vector.broadcast %12 : vector<1x64xf32> to vector<8x64xf32>
    %14 = arith.addf %11, %13 : vector<8x64xf32>
    %cst_11 = arith.constant 0.000000e+00 : f32
    %15 = vector.broadcast %cst_11 : f32 to vector<8x64xf32>
    %16 = arith.maximumf %14, %15 : vector<8x64xf32>
    %17 = tpu.transpose %16, [1, 0] : vector<8x64xf32> -> vector<64x8xf32>
    %c0_12 = arith.constant 0 : index
    %c0_13 = arith.constant 0 : index
    %18 = vector.load %arg6[%c0_12, %c0_13] : memref<64x1xf32, #tpu.memory_space<vmem>>, vector<64x1xf32>
    %19 = vector.broadcast %18 : vector<64x1xf32> to vector<64x8xf32>
    %20 = arith.mulf %17, %19 : vector<64x8xf32>
    %cst_14 = arith.constant dense<0.000000e+00> : vector<8xf32>
    %21 = vector.multi_reduction <add>, %20, %cst_14 [0] : vector<64x8xf32> to vector<8xf32>
    %22 = vector.shape_cast %21 : vector<8xf32> to vector<1x8xf32>
    %c0_15 = arith.constant 0 : index
    %c0_16 = arith.constant 0 : index
    %23 = memref.load %arg7[%c0_15, %c0_16] : memref<1x1xf32, #tpu.memory_space<smem>>
    %24 = vector.broadcast %23 : f32 to vector<1x8xf32>
    %25 = arith.addf %22, %24 : vector<1x8xf32>
    %c0_17 = arith.constant 0 : index
    %c0_18 = arith.constant 0 : index
    %26 = vector.load %arg8[%c0_17, %c0_18] : memref<1x8xf32, #tpu.memory_space<vmem>>, vector<1x8xf32>
    tpu.vector_store %arg8[%c0_17, %c0_18], %25 {strides = array<i32>} : memref<1x8xf32, #tpu.memory_space<vmem>>, vector<1x8xf32>,
    return
  }
  func.func @transform_0(%arg0: i32) -> (i32, i32) {
    %c0_i32 = arith.constant 0 : i32
    %c0_i32_0 = arith.constant 0 : i32
    return %arg0, %c0_i32 : i32, i32
  }
  func.func @transform_1(%arg0: i32) -> (i32, i32) {
    %c0_i32 = arith.constant 0 : i32
    %c0_i32_0 = arith.constant 0 : i32
    %c0_i32_1 = arith.constant 0 : i32
    return %c0_i32, %c0_i32_0 : i32, i32
  }
  func.func @transform_2(%arg0: i32) -> (i32, i32) {
    %c0_i32 = arith.constant 0 : i32
    %c0_i32_0 = arith.constant 0 : i32
    %c0_i32_1 = arith.constant 0 : i32
    return %c0_i32, %c0_i32_0 : i32, i32
  }
  func.func @transform_3(%arg0: i32) -> (i32, i32) {
    %c0_i32 = arith.constant 0 : i32
    %c0_i32_0 = arith.constant 0 : i32
    %c0_i32_1 = arith.constant 0 : i32
    return %c0_i32, %c0_i32_0 : i32, i32
  }
  func.func @transform_4(%arg0: i32) -> (i32, i32) {
    %c0_i32 = arith.constant 0 : i32
    %c0_i32_0 = arith.constant 0 : i32
    %c0_i32_1 = arith.constant 0 : i32
    return %c0_i32, %c0_i32_0 : i32, i32
  }
  func.func @transform_5(%arg0: i32) -> (i32, i32) {
    %c0_i32 = arith.constant 0 : i32
    %c0_i32_0 = arith.constant 0 : i32
    %c0_i32_1 = arith.constant 0 : i32
    return %c0_i32, %c0_i32_0 : i32, i32
  }
  func.func @transform_6(%arg0: i32) -> (i32, i32) {
    %c0_i32 = arith.constant 0 : i32
    %c0_i32_0 = arith.constant 0 : i32
    %c0_i32_1 = arith.constant 0 : i32
    return %c0_i32, %c0_i32_0 : i32, i32
  }
  func.func @transform_7(%arg0: i32) -> (i32, i32) {
    %c0_i32 = arith.constant 0 : i32
    %c0_i32_0 = arith.constant 0 : i32
    return %arg0, %c0_i32 : i32, i32
  }
}

</mosaic_0001>

<bundles_post_ra>
// kernel: tpu_custom_call.1
= control target key start
LH: loop header
LB: loop body
LE: loop exit
PB: predicated region body
PF: predicated region fallthrough
CT: control target
= control target key end

     0   :  { %v434_v1 = vmov 0.0   ;;  %vm435_vm0 = vmmov 0   ;;  %vm54_vm1 = vcmask 261120   ;;  %s564_s0 = inlined_call_operand.vmem [shape: f32[8,32], index: 0, kind: input, shape index: {}]   ;;  %s565_s1 = inlined_call_operand.vmem [shape: bf16[32,128], index: 1, kind: input, shape index: {}]   ;;  %s566_s2 = inlined_call_operand.vmem [shape: f32[1,128], index: 2, kind: input, shape index: {}]   ;;  %s567_s3 = inlined_call_operand.vmem [shape: bf16[128,64], index: 3, kind: input, shape index: {}]   ;;  %s568_s4 = inlined_call_operand.vmem [shape: f32[1,64], index: 4, kind: input, shape index: {}]   ;;  %s569_s5 = inlined_call_operand.vmem [shape: f32[64,1], index: 5, kind: input, shape index: {}]   ;;  %s570_s6 = inlined_call_operand.<no memory space> [shape: f32[1,1], index: 6, kind: input, shape index: {}]   ;;  %s571_s7 = inlined_call_operand.hbm [shape: f32[1,8], index: 7, kind: output, shape index: {}]  }
   0x1   :  { %v400_v0 = vld [vmem:[%s565_s1] sm:$0xff]   ;;  %366 = vmatprep.subr.bf16.mxu0 %v434_v1  ;;  %v401_v2 = vld [vmem:[%s565_s1 + $0x8] sm:$0xff]   ;;  %374 = vmatprep.subr.bf16.mxu1 %v434_v1  ;;  %v404_v7 = vld [vmem:[%s567_s3 + $0x10] sm:$0xff]  }
   0x2   :  { %367 = vmatpush3.bf16.msra.mxu0 %v400_v0  ;;  %370 = vmatprep.mubr.msk.bf16.mxu0 %vm435_vm0, %v434_v1  ;;  %v29_v3 = vld [vmem:[%s564_s0] sm:$0xff]  ;;  %v403_v6 = vld [vmem:[%s567_s3 + $0x8] sm:$0xff]  }
   0x3   :  { %368 = vmatprep.subr.bf16.mxu0 %v434_v1  ;;  %v402_v4 = vld [vmem:[%s567_s3] sm:$0xff]   ;;  %390 = vmatprep.mubr.msk.bf16.mxu1 %vm435_vm0, %v434_v1  ;;  %v30_v5 = vpack.c.bf16 %v29_v3, %v29_v3 }
   0x4   :  { %375 = vmatpush3.bf16.msra.mxu1 %v402_v4 }
   0x5   :  { %376 = vmatprep.subr.bf16.mxu1 %v434_v1 }
   0x6   :  { %369 = vmatpush3.bf16.msra.mxu0 %v401_v2 }
   0x8   :  { %377 = vmatpush3.bf16.msra.mxu1 %v403_v6 }
   0x9   :  { %371 = vmatmul.mubr.msk.bf16.vlgmr.msra.gmra.mrb[0].mxu0 %vm54_vm1, %v30_v5  ;;  %378 = vmatprep.subr.bf16.mxu1 %v434_v1 }
   0xa   :  { %13 = vsyncpa [#allocation4], 0  ;;  %v405_v8 = vld [vmem:[%s567_s3 + $0x18] sm:$0xff]   ;;  %v406_v9 = vld [vmem:[%s567_s3 + $0x20] sm:$0xff]   ;;  %v436_v14 = vmov 0   ;;  %vm300_vm2 = vcmask 64512  }
   0xb   :  { %v407_v10 = vld [vmem:[%s567_s3 + $0x28] sm:$0xff]   ;;  %v408_v11 = vld [vmem:[%s567_s3 + $0x30] sm:$0xff]   ;;  %v409_v12 = vld [vmem:[%s567_s3 + $0x38] sm:$0xff]   ;;  %398 = vset.pattern.permute.xlu0 %v436_v14  ;;  %399 = vset.pattern.permute.xlu1 %v436_v14  ;;  %s437_s14 = smov [#allocation3]   ;;  %vm325_vm3 = vcmask 57344  }
   0xc   :  { %379 = vmatpush3.bf16.msra.mxu1 %v404_v7  ;;  %v244_v13 = vld [vmem:[%s569_s5] sm:$0xff]  ;;  %v245_v15 = vld [vmem:[%s569_s5 + $0x8] sm:$0xff]  ;;  %v250_v17 = vld [vmem:[%s569_s5 + $0x30] sm:$0xff]  ;;  %s333_s15 = sshll.u32 %s437_s14, 4  ;;  %s334_s15 = int_to_ptr.vmem [resolvable:$true] %s333_s15 }
   0xd   :  { %380 = vmatprep.subr.bf16.mxu1 %v434_v1  ;;  %254 = vperm.xlu0 %398, %v244_v13   ;;  %v248_v16 = vld [vmem:[%s569_s5 + $0x20] sm:$0xff]  ;;  %v246_v26 = vld [vmem:[%s569_s5 + $0x10] sm:$0xff]  ;;  %v247_v27 = vld [vmem:[%s569_s5 + $0x18] sm:$0xff]  ;;  %s410_s16 = scalar_lea.vmem %s334_s15, 16  ;;  %s414_s17 = scalar_lea.vmem %s334_s15, 32 }
   0xe   :  { %v341_v18 = vld [vmem:[%s566_s2] ss:$0 sm:$0xff]  ;;  %264 = vperm.xlu1 %399, %v246_v26   ;;  %v249_v28 = vld [vmem:[%s569_s5 + $0x28] sm:$0xff]  ;;  %v251_v29 = vld [vmem:[%s569_s5 + $0x38] sm:$0xff]  ;;  %p411_p0 = scmp.ne.s32.totalorder %s334_s15, %s410_s16  ;;  %p415_p1 = scmp.lt.s32.totalorder %s334_s15, %s334_s15 }
   0xf   :  { %v345_v30 = vld [vmem:[%s568_s4] ss:$0 sm:$0xff]  ;;  %p416_p2 = scmp.lt.s32.totalorder %s414_s17, %s410_s16 }
  0x10   :  { %381 = vmatpush3.bf16.msra.mxu1 %v405_v8 }
  0x11   :  { %382 = vmatprep.subr.bf16.mxu1 %v434_v1  ;;  %259 = vperm.xlu0 %398, %v245_v15   ;;  %p417_p3 = por %p416_p2, %p415_p1 }
  0x12   :  { %269 = vperm.xlu1 %399, %v247_v27  }
  0x13   :  { %p418_p4 = pnand %p417_p3, %p411_p0 }
  0x14   :  { %383 = vmatpush3.bf16.msra.mxu1 %v406_v9 }
  0x15   :  { %384 = vmatprep.subr.bf16.mxu1 %v434_v1  ;;  %274 = vperm.xlu0 %398, %v248_v16  }
  0x16   :  { %279 = vperm.xlu1 %399, %v249_v28  }
  0x18   :  { %385 = vmatpush3.bf16.msra.mxu1 %v407_v10 }
  0x19   :  { %386 = vmatprep.subr.bf16.mxu1 %v434_v1  ;;  %284 = vperm.xlu0 %398, %v250_v17   ;;  %v323_v17 = vstv %s570_s6 }
  0x1a   :  { %289 = vperm.xlu1 %399, %v251_v29  }
  0x1c   :  { %387 = vmatpush3.bf16.msra.mxu1 %v408_v11 }
  0x1d   :  { %388 = vmatprep.subr.bf16.mxu1 %v434_v1 }
  0x20   :  { %389 = vmatpush3.bf16.msra.mxu1 %v409_v12 }
  0x8c   :  { %v255_v37 = vpop.permute.xlu0 %254 }
  0x8d   :  { %v265_v43 = vpop.permute.xlu1 %264 }
  0x90   :  { %v260_v38 = vpop.permute.xlu0 %259 }
  0x91   :  { %v270_v47 = vpop.permute.xlu1 %269 }
  0x94   :  { %v275_v39 = vpop.permute.xlu0 %274 }
  0x95   :  { %v280_v57 = vpop.permute.xlu1 %279 }
  0x98   :  { %v285_v40 = vpop.permute.xlu0 %284 }
  0x99   :  { %v290_v5 = vpop.permute.xlu1 %289 }
  0xdc   :  { %v92_v19 = vpop.f32.mrb[0].mxu0 }
  0xdd   :  { %v93_v20 = vadd.f32 %v341_v18, %v92_v19  ;;  %v372_v21 = vpop.f32.mrb[1].mxu0 }
  0xde   :  { %v95_v22 = vpop.f32.mrb[2].mxu0 }
  0xdf   :  { %v98_v23 = vmax.f32 %v93_v20, 0.0  ;;  %v373_v24 = vpop.f32.mrb[3].mxu0 }
  0xe1   :  { %v99_v25 = vpack.c.bf16 %v98_v23, %v98_v23 }
  0xe3   :  { %391 = vmatmul.mubr.bf16.vlgmr.msra.gmra.mrb[0].mxu1 %v99_v25 }
 0x1b6   :  { %v205_v31 = vpop.f32.mrb[0].mxu1 }
 0x1b7   :  { %v206_v32 = vadd.f32 %v345_v30, %v205_v31  ;;  %v392_v33 = vpop.f32.mrb[1].mxu1 }
 0x1b8   :  { %v208_v34 = vpop.f32.mrb[2].mxu1 }
 0x1b9   :  { %v211_v35 = vmax.f32 %v206_v32, 0.0  ;;  %v393_v36 = vpop.f32.mrb[3].mxu1 }
 0x1bb   :  { %212 = vxpose.xlu0.b32.start.end [1/1] (short) (narrow) %v211_v35, 64 }
 0x23b   :  { %v228_v41 = vpop.trf.xlu0 }
 0x23c   :  { %v292_v48 = vmul.f32 %v255_v37, %v228_v41 }
 0x23e   :  { %v301_v53 = vsel %vm300_vm2, %v292_v48, 0.0 }
 0x23f   :  { %v229_v42 = vpop.trf.xlu0 }
 0x240   :  { %v293_v46 = vmul.f32 %v260_v38, %v229_v42 }
 0x242   :  { %v302_v51 = vsel %vm300_vm2, %v293_v46, 0.0 }
 0x243   :  { %v230_v44 = vpop.trf.xlu0  ;;  %v303_v56 = vadd.f32 %v302_v51, %v301_v53 }
 0x244   :  { %v294_v49 = vmul.f32 %v265_v43, %v230_v44 }
 0x246   :  { %v304_v54 = vsel %vm300_vm2, %v294_v49, 0.0 }
 0x247   :  { %v231_v45 = vpop.trf.xlu0  ;;  %v305_v61 = vadd.f32 %v304_v54, %v303_v56 }
 0x248   :  { %v295_v52 = vmul.f32 %v270_v47, %v231_v45 }
 0x24a   :  { %v306_v59 = vsel %vm300_vm2, %v295_v52, 0.0 }
 0x24b   :  { %v232_v50 = vpop.trf.xlu0  ;;  %v307_v63 = vadd.f32 %v306_v59, %v305_v61 }
 0x24c   :  { %v296_v55 = vmul.f32 %v275_v39, %v232_v50 }
 0x24e   :  { %v308_v62 = vsel %vm300_vm2, %v296_v55, 0.0 }
 0x24f   :  { %v233_v58 = vpop.trf.xlu0  ;;  %v309_v3 = vadd.f32 %v308_v62, %v307_v63 }
 0x250   :  { %v297_v60 = vmul.f32 %v280_v57, %v233_v58 }
 0x252   :  { %v310_v1 = vsel %vm300_vm2, %v297_v60, 0.0 }
 0x253   :  { %v234_v0 = vpop.trf.xlu0  ;;  %v311_v6 = vadd.f32 %v310_v1, %v309_v3 }
 0x254   :  { %v298_v2 = vmul.f32 %v285_v40, %v234_v0 }
 0x256   :  { %v312_v4 = vsel %vm300_vm2, %v298_v2, 0.0 }
 0x257   :  { %v235_v7 = vpop.trf.xlu0  ;;  %v313_v9 = vadd.f32 %v312_v4, %v311_v6 }
 0x258   :  { %v299_v8 = vmul.f32 %v290_v5, %v235_v7 }
 0x25a   :  { %v314_v10 = vsel %vm300_vm2, %v299_v8, 0.0 }
 0x25b   :  { %v315_v11 = vadd.f32 %v314_v10, %v313_v9 }
 0x25d   :  { %v316_v12 = vrot.slane %v315_v11, 4 }
 0x25f   :  { %v317_v13 = vadd.f32 %v316_v12, %v315_v11 }
 0x261   :  { %v318_v14 = vrot.slane %v317_v13, 2 }
 0x263   :  { %v319_v15 = vadd.f32 %v318_v14, %v317_v13 }
 0x265   :  { %v320_v16 = vrot.slane %v319_v15, 1 }
 0x267   :  { %v321_v18 = vadd.f32 %v320_v16, %v319_v15 }
 0x269   :  { %v324_v19 = vadd.f32 %v323_v17, %v321_v18 }
 0x26b   :  { %326 = vst.msk [vmem:[#allocation3] sm:$0x1] %vm325_vm3, %v324_v19 }
 0x26c   :  { %421 = shalt.err (!%p418_p4)
}
 0x26d   :  { %s422_s20 = scalar_lea.hbm %s571_s7, 16 }
 0x26e   :  { %p423_p5 = scmp.ne.s32.totalorder %s571_s7, %s422_s20  ;;  %p426_p6 = scmp.lt.u32.totalorder %s422_s20, %s571_s7 }
 0x270   :  { %p428_p7 = pnand %p426_p6, %p423_p5 }
 0x272   :  { %431 = shalt.err (!%p428_p7)
}
 0x273   :  { %336 = dma.vmem_to_hbm [thread:$0]  %s334_s15, 16, %s571_s7, [#allocation4]  }
 0x274   :  { %432 = dma.done.wait [#allocation4], 16  }
 0x275   :  { %433 = vsyncadd [#allocation4], 4294967280 }
 0x276   :  { %340 = vsyncpa [#allocation4], 1 }

</bundles_post_ra>
